<compile_context>
chip_gen: v5e
topology: v5e:2x2
jax: 0.10.0
libtpu: 0.0.40
codegen_flags: <defaults>
</compile_context>

<pallas_src>
import functools

import numpy as np
import jax
import jax.numpy as jnp
from jax.experimental import pallas as pl
from jax.experimental.pallas import tpu as pltpu


# ---------------------------------------------------------------------------
# Pallas kernels (whole-field, grid-less; fields are tiny and fit VMEM easily)
# ---------------------------------------------------------------------------
def _lap5(v, h, w):
    """Periodic 5-point Laplacian of a 2D (H, W) register value via XLU rolls."""
    return (pltpu.roll(v, 1, axis=0) + pltpu.roll(v, h - 1, axis=0)
            + pltpu.roll(v, 1, axis=1) + pltpu.roll(v, w - 1, axis=1) - 4.0 * v)


def _diffusion_kernel(u_ref, k_ref, *, nu):
    """k = nu * Laplacian(u) for both velocity components in one invocation."""
    u = u_ref[...].astype(jnp.float32)                   # (C, H, W)
    c, h, w = u.shape
    for ci in range(c):                                  # static, C == 2
        k_ref[ci] = (nu * _lap5(u[ci], h, w)).astype(k_ref.dtype)


def _combine_div_kernel(*refs, coefs):
    """Fused: u_star = u0 + sum_j coefs[j] * k_j  and  div(u_star).

    refs = (u0, k_0..k_{n-1}, u_star_out, div_out). `coefs` already contain the dt factor
    (compile-time Python floats); zero-coefficient stages were dropped by the wrapper.
    """
    n = len(coefs)
    u0_ref = refs[0]
    k_refs = refs[1:1 + n]
    u_star_ref = refs[1 + n]
    div_ref = refs[2 + n]

    acc = u0_ref[...].astype(jnp.float32)                # (C, H, W)
    for cf, kr in zip(coefs, k_refs):                    # static unrolled (<= 4)
        acc = acc + cf * kr[...].astype(jnp.float32)
    u_star_ref[...] = acc.astype(u_star_ref.dtype)

    ux = acc[0]
    uy = acc[1]
    h, w = ux.shape
    dudx = pltpu.roll(ux, w - 1, axis=1) - ux            # forward difference (periodic)
    dvdy = pltpu.roll(uy, h - 1, axis=0) - uy
    div_ref[...] = (dudx + dvdy).astype(div_ref.dtype)


def _proj_diffuse_kernel(u_ref, phi_ref, u_out_ref, k_out_ref, *, nu):
    """Fused: u_proj = u - grad(phi) (backward diff, adjoint to the forward divergence)
    and k = nu * Laplacian(u_proj)."""
    phi = phi_ref[...].astype(jnp.float32)
    h, w = phi.shape
    gx = phi - pltpu.roll(phi, 1, axis=1)                # phi[i, j] - phi[i, j-1]
    gy = phi - pltpu.roll(phi, 1, axis=0)                # phi[i, j] - phi[i-1, j]
    u0c = u_ref[0].astype(jnp.float32) - gx
    u1c = u_ref[1].astype(jnp.float32) - gy
    u_out_ref[0] = u0c.astype(u_out_ref.dtype)
    u_out_ref[1] = u1c.astype(u_out_ref.dtype)
    k_out_ref[0] = (nu * _lap5(u0c, h, w)).astype(k_out_ref.dtype)
    k_out_ref[1] = (nu * _lap5(u1c, h, w)).astype(k_out_ref.dtype)


def _proj_only_kernel(u_ref, phi_ref, u_out_ref):
    """u_proj = u - grad(phi) (the final RK stage needs no further explicit terms)."""
    phi = phi_ref[...].astype(jnp.float32)
    gx = phi - pltpu.roll(phi, 1, axis=1)
    gy = phi - pltpu.roll(phi, 1, axis=0)
    u_out_ref[0] = (u_ref[0].astype(jnp.float32) - gx).astype(u_out_ref.dtype)
    u_out_ref[1] = (u_ref[1].astype(jnp.float32) - gy).astype(u_out_ref.dtype)


def _divergence_kernel(u_ref, div_ref):
    """Standalone forward-difference periodic divergence (API-compat fallback path)."""
    ux = u_ref[0].astype(jnp.float32)
    uy = u_ref[1].astype(jnp.float32)
    h, w = ux.shape
    div_ref[...] = ((pltpu.roll(ux, w - 1, axis=1) - ux)
                    + (pltpu.roll(uy, h - 1, axis=0) - uy)).astype(div_ref.dtype)


# ---------------------------------------------------------------------------
# Pallas wrappers
# ---------------------------------------------------------------------------
# All wrappers are grid-less pallas_calls: the whole (C,H,W) field (tens of KiB here) is one
# lane-dense VMEM block, which removes the per-channel grid loop overhead and the masked
# partial-store penalty of small output blocks.
# TODO(synk): when H*W grows to multi-MiB fields, switch to H-tiled BlockSpecs with +-1 halo
# rows (instead of whole-field rolls) and set vmem_limit_bytes sized for v7x's 64 MiB VMEM.


def explicit_terms_pallas(u, nu):
    c, h, w = u.shape
    return pl.pallas_call(
        functools.partial(_diffusion_kernel, nu=float(nu)),
        out_shape=jax.ShapeDtypeStruct((c, h, w), u.dtype),
    )(u)


def combine_and_divergence_pallas(u0, ks, coefs, dt):
    """Fused u_star = u0 + dt*sum_j coefs[j]*k_j and div(u_star) in one pallas_call.

    dt and the Butcher coefficients are static Python floats baked into the kernel; zero
    coefficients are dropped so their k_j is never materialized, stacked, or read from HBM.
    """
    c, h, w = u0.shape
    pairs = [(float(dt) * float(cf), kj) for cf, kj in zip(coefs, ks) if float(cf) != 0.0]
    scaled = tuple(p[0] for p in pairs)
    k_used = [p[1] for p in pairs]
    kernel = functools.partial(_combine_div_kernel, coefs=scaled)
    return pl.pallas_call(
        kernel,
        out_shape=(jax.ShapeDtypeStruct((c, h, w), u0.dtype),
                   jax.ShapeDtypeStruct((h, w), u0.dtype)),
    )(u0, *k_used)


def project_and_diffuse_pallas(u_star, phi, nu):
    c, h, w = u_star.shape
    return pl.pallas_call(
        functools.partial(_proj_diffuse_kernel, nu=float(nu)),
        out_shape=(jax.ShapeDtypeStruct((c, h, w), u_star.dtype),
                   jax.ShapeDtypeStruct((c, h, w), u_star.dtype)),
    )(u_star, phi)


def project_pallas(u_star, phi):
    c, h, w = u_star.shape
    return pl.pallas_call(
        _proj_only_kernel,
        out_shape=jax.ShapeDtypeStruct((c, h, w), u_star.dtype),
    )(u_star, phi)


def divergence_pallas(u):
    c, h, w = u.shape
    return pl.pallas_call(
        _divergence_kernel,
        out_shape=jax.ShapeDtypeStruct((h, w), u.dtype),
    )(u)


# ---------------------------------------------------------------------------
# Spectral Poisson inverse (constant of the grid, cached)
# ---------------------------------------------------------------------------
@functools.lru_cache(maxsize=None)
def _poisson_inverse_multiplier(h, w):
    """Inverse eigenvalues of the periodic 5-point Laplacian (dx = dy = 1), computed with
    numpy once per (H, W) so it folds into the jitted graph as a constant."""
    kx = 2.0 * np.pi * np.fft.fftfreq(w)
    ky = 2.0 * np.pi * np.fft.fftfreq(h)
    lam = (2.0 * np.cos(ky)[:, None] - 2.0) + (2.0 * np.cos(kx)[None, :] - 2.0)
    inv = np.where(lam == 0.0, 0.0, 1.0 / np.where(lam == 0.0, 1.0, lam))
    return jnp.asarray(inv, dtype=jnp.float32)


# ---------------------------------------------------------------------------
# Concrete ProjectionExplicitODE (diffusion + Helmholtz projection)
# ---------------------------------------------------------------------------
class DiffusionProjectionODE:
    """Concrete ProjectionExplicitODE: explicit term = nu * Laplacian(u),
    pressure_projection = discrete Helmholtz projection onto divergence-free fields.

    Exposes fused Pallas fast-path methods (used by PallasRKStepper) alongside the
    reference explicit_terms / pressure_projection interface.
    """

    def __init__(self, nu=0.05):
        self.nu = float(nu)

    # --- reference interface (matches ProjectionExplicitODE) -------------------
    def explicit_terms(self, u, dt):
        del dt
        return explicit_terms_pallas(u, self.nu)

    def pressure_projection(self, u):
        div = divergence_pallas(u)
        phi = self.solve_pressure(div)
        return project_pallas(u, phi)

    # --- fused fast path --------------------------------------------------------
    def combine_and_divergence(self, u0, ks, coefs, dt):
        return combine_and_divergence_pallas(u0, ks, coefs, dt)

    def solve_pressure(self, div):
        # TODO(synk): FFT-based Poisson inverse has no clean Pallas equivalent; kept in XLA.
        h, w = div.shape
        inv = _poisson_inverse_multiplier(h, w)
        phi_hat = jnp.fft.fft2(div) * inv
        return jnp.real(jnp.fft.ifft2(phi_hat)).astype(div.dtype)

    def project_and_explicit_terms(self, u_star, phi, dt):
        del dt
        return project_and_diffuse_pallas(u_star, phi, self.nu)

    def project(self, u_star, phi):
        return project_pallas(u_star, phi)


# ---------------------------------------------------------------------------
# RKStepper (JAX / Pallas port of the PyTorch module)
# ---------------------------------------------------------------------------
class PallasRKStepper:
    """Explicit Runge-Kutta stepper matching RKStepper.forward semantics, with the per-stage
    linear combination / divergence / projection-correction / explicit-terms evaluations
    fused into Pallas kernels (2 Pallas calls + 1 XLA FFT solve per RK stage)."""

    _METHOD_MAP = {
        "forward_euler": {"a": [], "b": [1.0]},
        "midpoint": {"a": [[1 / 2]], "b": [0.0, 1.0]},
        "heun_rk2": {"a": [[1.0]], "b": [1 / 2, 1 / 2]},
        "classic_rk4": {
            "a": [[1 / 2], [0.0, 1 / 2], [0.0, 0.0, 1.0]],
            "b": [1 / 6, 1 / 3, 1 / 3, 1 / 6],
        },
    }

    def __init__(self, tableau=None, method=None, dtype=jnp.float32):
        del dtype  # coefficients are baked in as compile-time Python floats
        if tableau is not None:
            tab = tableau
        else:
            if method not in self._METHOD_MAP:
                raise ValueError(f"Unknown RK method: {method}")
            tab = self._METHOD_MAP[method]
        a, b = tab["a"], tab["b"]
        if len(a) + 1 != len(b):
            raise ValueError("Inconsistent Butcher tableau: len(a) + 1 != len(b)")
        # Deterministic "parameters" (Butcher tableau coefficients), kept as Python floats
        # so zero coefficients can be pruned and dt*coef folded into the kernels.
        self.alpha = [[float(x) for x in row] for row in a]
        self.beta = [float(x) for x in b]
        self._num_steps = len(b)

    def __call__(self, u0, dt, equation):
        num_steps = self._num_steps
        k = [None] * num_steps
        k[0] = equation.explicit_terms(u0, dt)
        for i in range(1, num_steps):
            # fused: u_star = u0 + dt * sum_j alpha[i-1][j] * k[j]   and   div(u_star)
            u_star, div = equation.combine_and_divergence(u0, k[:i], self.alpha[i - 1], dt)
            phi = equation.solve_pressure(div)
            # fused: u[i] = u_star - grad(phi)   and   k[i] = explicit_terms(u[i], dt)
            _u_i, k[i] = equation.project_and_explicit_terms(u_star, phi, dt)
        u_star, div = equation.combine_and_divergence(u0, k, self.beta, dt)
        phi = equation.solve_pressure(div)
        return equation.project(u_star, phi)


# ---------------------------------------------------------------------------
# Demo
# ---------------------------------------------------------------------------
if __name__ == "__main__":
    C, H, W = 2, 16, 128  # small periodic grid, lane-dense last dim
    key = jax.random.PRNGKey(0)
    u0 = jax.random.normal(key, (C, H, W), dtype=jnp.float32)

    stepper = PallasRKStepper(method="classic_rk4")
    equation = DiffusionProjectionODE(nu=0.05)
    dt = 0.01

    @jax.jit
    def step(u):
        return stepper(u, dt, equation)

    u1 = step(u0)
    jax.block_until_ready(u1)
    assert u1.shape == (C, H, W) and u1.dtype == jnp.float32
    assert bool(jnp.all(jnp.isfinite(u1)))
    print("KERNEL_OK")
</pallas_src>

<mosaic_0001>
module attributes {stable_mosaic.version = 11 : i64} {
  func.func @_combine_div_kernel(%arg0: memref<2x16x128xf32, #tpu.memory_space<vmem>>, %arg1: memref<2x16x128xf32, #tpu.memory_space<vmem>>, %arg2: memref<2x16x128xf32, #tpu.memory_space<vmem>>, %arg3: memref<16x128xf32, #tpu.memory_space<vmem>>) attributes {dimension_semantics = [], scalar_prefetch = 0 : i64, scratch_operands = 0 : i64, tpu.core_type = #tpu.core_type<tc>} {
    %c0 = arith.constant 0 : index
    %c0_0 = arith.constant 0 : index
    %c0_1 = arith.constant 0 : index
    %0 = vector.load %arg0[%c0, %c0_0, %c0_1] : memref<2x16x128xf32, #tpu.memory_space<vmem>>, vector<2x16x128xf32>
    %c0_2 = arith.constant 0 : index
    %c0_3 = arith.constant 0 : index
    %c0_4 = arith.constant 0 : index
    %1 = vector.load %arg1[%c0_2, %c0_3, %c0_4] : memref<2x16x128xf32, #tpu.memory_space<vmem>>, vector<2x16x128xf32>
    %cst = arith.constant 5.000000e-03 : f32
    %2 = vector.broadcast %cst : f32 to vector<2x16x128xf32>
    %3 = arith.mulf %2, %1 : vector<2x16x128xf32>
    %4 = arith.addf %0, %3 : vector<2x16x128xf32>
    %c0_5 = arith.constant 0 : index
    %c0_6 = arith.constant 0 : index
    %c0_7 = arith.constant 0 : index
    %5 = vector.load %arg2[%c0_5, %c0_6, %c0_7] : memref<2x16x128xf32, #tpu.memory_space<vmem>>, vector<2x16x128xf32>
    tpu.vector_store %arg2[%c0_5, %c0_6, %c0_7], %4 {strides = array<i32>} : memref<2x16x128xf32, #tpu.memory_space<vmem>>, vector<2x16x128xf32>,
    %6 = vector.extract_strided_slice %4 {offsets = [0, 0, 0], sizes = [1, 16, 128], strides = [1, 1, 1]} : vector<2x16x128xf32> to vector<1x16x128xf32>
    %7 = vector.shape_cast %6 : vector<1x16x128xf32> to vector<16x128xf32>
    %8 = vector.extract_strided_slice %4 {offsets = [1, 0, 0], sizes = [1, 16, 128], strides = [1, 1, 1]} : vector<2x16x128xf32> to vector<1x16x128xf32>
    %9 = vector.shape_cast %8 : vector<1x16x128xf32> to vector<16x128xf32>
    %c127_i32 = arith.constant 127 : i32
    %10 = tpu.dynamic_rotate %7 by %c127_i32 dim 1 : vector<16x128xf32>, i32 -> vector<16x128xf32>
    %11 = arith.subf %10, %7 : vector<16x128xf32>
    %c15_i32 = arith.constant 15 : i32
    %12 = tpu.dynamic_rotate %9 by %c15_i32 dim 0 : vector<16x128xf32>, i32 -> vector<16x128xf32>
    %13 = arith.subf %12, %9 : vector<16x128xf32>
    %14 = arith.addf %11, %13 : vector<16x128xf32>
    %c0_8 = arith.constant 0 : index
    %c0_9 = arith.constant 0 : index
    %15 = vector.load %arg3[%c0_8, %c0_9] : memref<16x128xf32, #tpu.memory_space<vmem>>, vector<16x128xf32>
    tpu.vector_store %arg3[%c0_8, %c0_9], %14 {strides = array<i32>} : memref<16x128xf32, #tpu.memory_space<vmem>>, vector<16x128xf32>,
    return
  }
}

module attributes {stable_mosaic.version = 11 : i64} {
  func.func @_diffusion_kernel(%arg0: memref<2x16x128xf32, #tpu.memory_space<vmem>>, %arg1: memref<2x16x128xf32, #tpu.memory_space<vmem>>) attributes {dimension_semantics = [], scalar_prefetch = 0 : i64, scratch_operands = 0 : i64, tpu.core_type = #tpu.core_type<tc>} {
    %c0 = arith.constant 0 : index
    %c0_0 = arith.constant 0 : index
    %c0_1 = arith.constant 0 : index
    %0 = vector.load %arg0[%c0, %c0_0, %c0_1] : memref<2x16x128xf32, #tpu.memory_space<vmem>>, vector<2x16x128xf32>
    %1 = vector.extract_strided_slice %0 {offsets = [0, 0, 0], sizes = [1, 16, 128], strides = [1, 1, 1]} : vector<2x16x128xf32> to vector<1x16x128xf32>
    %2 = vector.shape_cast %1 : vector<1x16x128xf32> to vector<16x128xf32>
    %c1_i32 = arith.constant 1 : i32
    %3 = tpu.dynamic_rotate %2 by %c1_i32 dim 0 : vector<16x128xf32>, i32 -> vector<16x128xf32>
    %c15_i32 = arith.constant 15 : i32
    %4 = tpu.dynamic_rotate %2 by %c15_i32 dim 0 : vector<16x128xf32>, i32 -> vector<16x128xf32>
    %5 = arith.addf %3, %4 : vector<16x128xf32>
    %c1_i32_2 = arith.constant 1 : i32
    %6 = tpu.dynamic_rotate %2 by %c1_i32_2 dim 1 : vector<16x128xf32>, i32 -> vector<16x128xf32>
    %7 = arith.addf %5, %6 : vector<16x128xf32>
    %c127_i32 = arith.constant 127 : i32
    %8 = tpu.dynamic_rotate %2 by %c127_i32 dim 1 : vector<16x128xf32>, i32 -> vector<16x128xf32>
    %9 = arith.addf %7, %8 : vector<16x128xf32>
    %cst = arith.constant 4.000000e+00 : f32
    %10 = vector.broadcast %cst : f32 to vector<16x128xf32>
    %11 = arith.mulf %10, %2 : vector<16x128xf32>
    %12 = arith.subf %9, %11 : vector<16x128xf32>
    %cst_3 = arith.constant 5.000000e-02 : f32
    %13 = vector.broadcast %cst_3 : f32 to vector<16x128xf32>
    %14 = arith.mulf %13, %12 : vector<16x128xf32>
    %c0_4 = arith.constant 0 : index
    %c0_5 = arith.constant 0 : index
    %c0_6 = arith.constant 0 : index
    %15 = vector.load %arg1[%c0_4, %c0_5, %c0_6] : memref<2x16x128xf32, #tpu.memory_space<vmem>>, vector<1x16x128xf32>
    %16 = vector.shape_cast %15 : vector<1x16x128xf32> to vector<16x128xf32>
    %17 = vector.shape_cast %14 : vector<16x128xf32> to vector<1x16x128xf32>
    tpu.vector_store %arg1[%c0_4, %c0_5, %c0_6], %17 {strides = array<i32>} : memref<2x16x128xf32, #tpu.memory_space<vmem>>, vector<1x16x128xf32>,
    %18 = vector.extract_strided_slice %0 {offsets = [1, 0, 0], sizes = [1, 16, 128], strides = [1, 1, 1]} : vector<2x16x128xf32> to vector<1x16x128xf32>
    %19 = vector.shape_cast %18 : vector<1x16x128xf32> to vector<16x128xf32>
    %c1_i32_7 = arith.constant 1 : i32
    %20 = tpu.dynamic_rotate %19 by %c1_i32_7 dim 0 : vector<16x128xf32>, i32 -> vector<16x128xf32>
    %c15_i32_8 = arith.constant 15 : i32
    %21 = tpu.dynamic_rotate %19 by %c15_i32_8 dim 0 : vector<16x128xf32>, i32 -> vector<16x128xf32>
    %22 = arith.addf %20, %21 : vector<16x128xf32>
    %c1_i32_9 = arith.constant 1 : i32
    %23 = tpu.dynamic_rotate %19 by %c1_i32_9 dim 1 : vector<16x128xf32>, i32 -> vector<16x128xf32>
    %24 = arith.addf %22, %23 : vector<16x128xf32>
    %c127_i32_10 = arith.constant 127 : i32
    %25 = tpu.dynamic_rotate %19 by %c127_i32_10 dim 1 : vector<16x128xf32>, i32 -> vector<16x128xf32>
    %26 = arith.addf %24, %25 : vector<16x128xf32>
    %cst_11 = arith.constant 4.000000e+00 : f32
    %27 = vector.broadcast %cst_11 : f32 to vector<16x128xf32>
    %28 = arith.mulf %27, %19 : vector<16x128xf32>
    %29 = arith.subf %26, %28 : vector<16x128xf32>
    %cst_12 = arith.constant 5.000000e-02 : f32
    %30 = vector.broadcast %cst_12 : f32 to vector<16x128xf32>
    %31 = arith.mulf %30, %29 : vector<16x128xf32>
    %c1 = arith.constant 1 : index
    %c0_13 = arith.constant 0 : index
    %c0_14 = arith.constant 0 : index
    %32 = vector.load %arg1[%c1, %c0_13, %c0_14] : memref<2x16x128xf32, #tpu.memory_space<vmem>>, vector<1x16x128xf32>
    %33 = vector.shape_cast %32 : vector<1x16x128xf32> to vector<16x128xf32>
    %34 = vector.shape_cast %31 : vector<16x128xf32> to vector<1x16x128xf32>
    tpu.vector_store %arg1[%c1, %c0_13, %c0_14], %34 {strides = array<i32>} : memref<2x16x128xf32, #tpu.memory_space<vmem>>, vector<1x16x128xf32>,
    return
  }
}

module attributes {stable_mosaic.version = 11 : i64} {
  func.func @_proj_diffuse_kernel(%arg0: memref<2x16x128xf32, #tpu.memory_space<vmem>>, %arg1: memref<16x128xf32, #tpu.memory_space<vmem>>, %arg2: memref<2x16x128xf32, #tpu.memory_space<vmem>>, %arg3: memref<2x16x128xf32, #tpu.memory_space<vmem>>) attributes {dimension_semantics = [], scalar_prefetch = 0 : i64, scratch_operands = 0 : i64, tpu.core_type = #tpu.core_type<tc>} {
    %c0 = arith.constant 0 : index
    %c0_0 = arith.constant 0 : index
    %0 = vector.load %arg1[%c0, %c0_0] : memref<16x128xf32, #tpu.memory_space<vmem>>, vector<16x128xf32>
    %c1_i32 = arith.constant 1 : i32
    %1 = tpu.dynamic_rotate %0 by %c1_i32 dim 1 : vector<16x128xf32>, i32 -> vector<16x128xf32>
    %2 = arith.subf %0, %1 : vector<16x128xf32>
    %c1_i32_1 = arith.constant 1 : i32
    %3 = tpu.dynamic_rotate %0 by %c1_i32_1 dim 0 : vector<16x128xf32>, i32 -> vector<16x128xf32>
    %4 = arith.subf %0, %3 : vector<16x128xf32>
    %c0_2 = arith.constant 0 : index
    %c0_3 = arith.constant 0 : index
    %c0_4 = arith.constant 0 : index
    %5 = vector.load %arg0[%c0_2, %c0_3, %c0_4] : memref<2x16x128xf32, #tpu.memory_space<vmem>>, vector<1x16x128xf32>
    %6 = vector.shape_cast %5 : vector<1x16x128xf32> to vector<16x128xf32>
    %7 = arith.subf %6, %2 : vector<16x128xf32>
    %c1 = arith.constant 1 : index
    %c0_5 = arith.constant 0 : index
    %c0_6 = arith.constant 0 : index
    %8 = vector.load %arg0[%c1, %c0_5, %c0_6] : memref<2x16x128xf32, #tpu.memory_space<vmem>>, vector<1x16x128xf32>
    %9 = vector.shape_cast %8 : vector<1x16x128xf32> to vector<16x128xf32>
    %10 = arith.subf %9, %4 : vector<16x128xf32>
    %c0_7 = arith.constant 0 : index
    %c0_8 = arith.constant 0 : index
    %c0_9 = arith.constant 0 : index
    %11 = vector.load %arg2[%c0_7, %c0_8, %c0_9] : memref<2x16x128xf32, #tpu.memory_space<vmem>>, vector<1x16x128xf32>
    %12 = vector.shape_cast %11 : vector<1x16x128xf32> to vector<16x128xf32>
    %13 = vector.shape_cast %7 : vector<16x128xf32> to vector<1x16x128xf32>
    tpu.vector_store %arg2[%c0_7, %c0_8, %c0_9], %13 {strides = array<i32>} : memref<2x16x128xf32, #tpu.memory_space<vmem>>, vector<1x16x128xf32>,
    %c1_10 = arith.constant 1 : index
    %c0_11 = arith.constant 0 : index
    %c0_12 = arith.constant 0 : index
    %14 = vector.load %arg2[%c1_10, %c0_11, %c0_12] : memref<2x16x128xf32, #tpu.memory_space<vmem>>, vector<1x16x128xf32>
    %15 = vector.shape_cast %14 : vector<1x16x128xf32> to vector<16x128xf32>
    %16 = vector.shape_cast %10 : vector<16x128xf32> to vector<1x16x128xf32>
    tpu.vector_store %arg2[%c1_10, %c0_11, %c0_12], %16 {strides = array<i32>} : memref<2x16x128xf32, #tpu.memory_space<vmem>>, vector<1x16x128xf32>,
    %c1_i32_13 = arith.constant 1 : i32
    %17 = tpu.dynamic_rotate %7 by %c1_i32_13 dim 0 : vector<16x128xf32>, i32 -> vector<16x128xf32>
    %c15_i32 = arith.constant 15 : i32
    %18 = tpu.dynamic_rotate %7 by %c15_i32 dim 0 : vector<16x128xf32>, i32 -> vector<16x128xf32>
    %19 = arith.addf %17, %18 : vector<16x128xf32>
    %c1_i32_14 = arith.constant 1 : i32
    %20 = tpu.dynamic_rotate %7 by %c1_i32_14 dim 1 : vector<16x128xf32>, i32 -> vector<16x128xf32>
    %21 = arith.addf %19, %20 : vector<16x128xf32>
    %c127_i32 = arith.constant 127 : i32
    %22 = tpu.dynamic_rotate %7 by %c127_i32 dim 1 : vector<16x128xf32>, i32 -> vector<16x128xf32>
    %23 = arith.addf %21, %22 : vector<16x128xf32>
    %cst = arith.constant 4.000000e+00 : f32
    %24 = vector.broadcast %cst : f32 to vector<16x128xf32>
    %25 = arith.mulf %24, %7 : vector<16x128xf32>
    %26 = arith.subf %23, %25 : vector<16x128xf32>
    %cst_15 = arith.constant 5.000000e-02 : f32
    %27 = vector.broadcast %cst_15 : f32 to vector<16x128xf32>
    %28 = arith.mulf %27, %26 : vector<16x128xf32>
    %c0_16 = arith.constant 0 : index
    %c0_17 = arith.constant 0 : index
    %c0_18 = arith.constant 0 : index
    %29 = vector.load %arg3[%c0_16, %c0_17, %c0_18] : memref<2x16x128xf32, #tpu.memory_space<vmem>>, vector<1x16x128xf32>
    %30 = vector.shape_cast %29 : vector<1x16x128xf32> to vector<16x128xf32>
    %31 = vector.shape_cast %28 : vector<16x128xf32> to vector<1x16x128xf32>
    tpu.vector_store %arg3[%c0_16, %c0_17, %c0_18], %31 {strides = array<i32>} : memref<2x16x128xf32, #tpu.memory_space<vmem>>, vector<1x16x128xf32>,
    %c1_i32_19 = arith.constant 1 : i32
    %32 = tpu.dynamic_rotate %10 by %c1_i32_19 dim 0 : vector<16x128xf32>, i32 -> vector<16x128xf32>
    %c15_i32_20 = arith.constant 15 : i32
    %33 = tpu.dynamic_rotate %10 by %c15_i32_20 dim 0 : vector<16x128xf32>, i32 -> vector<16x128xf32>
    %34 = arith.addf %32, %33 : vector<16x128xf32>
    %c1_i32_21 = arith.constant 1 : i32
    %35 = tpu.dynamic_rotate %10 by %c1_i32_21 dim 1 : vector<16x128xf32>, i32 -> vector<16x128xf32>
    %36 = arith.addf %34, %35 : vector<16x128xf32>
    %c127_i32_22 = arith.constant 127 : i32
    %37 = tpu.dynamic_rotate %10 by %c127_i32_22 dim 1 : vector<16x128xf32>, i32 -> vector<16x128xf32>
    %38 = arith.addf %36, %37 : vector<16x128xf32>
    %cst_23 = arith.constant 4.000000e+00 : f32
    %39 = vector.broadcast %cst_23 : f32 to vector<16x128xf32>
    %40 = arith.mulf %39, %10 : vector<16x128xf32>
    %41 = arith.subf %38, %40 : vector<16x128xf32>
    %cst_24 = arith.constant 5.000000e-02 : f32
    %42 = vector.broadcast %cst_24 : f32 to vector<16x128xf32>
    %43 = arith.mulf %42, %41 : vector<16x128xf32>
    %c1_25 = arith.constant 1 : index
    %c0_26 = arith.constant 0 : index
    %c0_27 = arith.constant 0 : index
    %44 = vector.load %arg3[%c1_25, %c0_26, %c0_27] : memref<2x16x128xf32, #tpu.memory_space<vmem>>, vector<1x16x128xf32>
    %45 = vector.shape_cast %44 : vector<1x16x128xf32> to vector<16x128xf32>
    %46 = vector.shape_cast %43 : vector<16x128xf32> to vector<1x16x128xf32>
    tpu.vector_store %arg3[%c1_25, %c0_26, %c0_27], %46 {strides = array<i32>} : memref<2x16x128xf32, #tpu.memory_space<vmem>>, vector<1x16x128xf32>,
    return
  }
}

module attributes {stable_mosaic.version = 11 : i64} {
  func.func @_combine_div_kernel(%arg0: memref<2x16x128xf32, #tpu.memory_space<vmem>>, %arg1: memref<2x16x128xf32, #tpu.memory_space<vmem>>, %arg2: memref<2x16x128xf32, #tpu.memory_space<vmem>>, %arg3: memref<16x128xf32, #tpu.memory_space<vmem>>) attributes {dimension_semantics = [], scalar_prefetch = 0 : i64, scratch_operands = 0 : i64, tpu.core_type = #tpu.core_type<tc>} {
    %c0 = arith.constant 0 : index
    %c0_0 = arith.constant 0 : index
    %c0_1 = arith.constant 0 : index
    %0 = vector.load %arg0[%c0, %c0_0, %c0_1] : memref<2x16x128xf32, #tpu.memory_space<vmem>>, vector<2x16x128xf32>
    %c0_2 = arith.constant 0 : index
    %c0_3 = arith.constant 0 : index
    %c0_4 = arith.constant 0 : index
    %1 = vector.load %arg1[%c0_2, %c0_3, %c0_4] : memref<2x16x128xf32, #tpu.memory_space<vmem>>, vector<2x16x128xf32>
    %cst = arith.constant 0.00999999977 : f32
    %2 = vector.broadcast %cst : f32 to vector<2x16x128xf32>
    %3 = arith.mulf %2, %1 : vector<2x16x128xf32>
    %4 = arith.addf %0, %3 : vector<2x16x128xf32>
    %c0_5 = arith.constant 0 : index
    %c0_6 = arith.constant 0 : index
    %c0_7 = arith.constant 0 : index
    %5 = vector.load %arg2[%c0_5, %c0_6, %c0_7] : memref<2x16x128xf32, #tpu.memory_space<vmem>>, vector<2x16x128xf32>
    tpu.vector_store %arg2[%c0_5, %c0_6, %c0_7], %4 {strides = array<i32>} : memref<2x16x128xf32, #tpu.memory_space<vmem>>, vector<2x16x128xf32>,
    %6 = vector.extract_strided_slice %4 {offsets = [0, 0, 0], sizes = [1, 16, 128], strides = [1, 1, 1]} : vector<2x16x128xf32> to vector<1x16x128xf32>
    %7 = vector.shape_cast %6 : vector<1x16x128xf32> to vector<16x128xf32>
    %8 = vector.extract_strided_slice %4 {offsets = [1, 0, 0], sizes = [1, 16, 128], strides = [1, 1, 1]} : vector<2x16x128xf32> to vector<1x16x128xf32>
    %9 = vector.shape_cast %8 : vector<1x16x128xf32> to vector<16x128xf32>
    %c127_i32 = arith.constant 127 : i32
    %10 = tpu.dynamic_rotate %7 by %c127_i32 dim 1 : vector<16x128xf32>, i32 -> vector<16x128xf32>
    %11 = arith.subf %10, %7 : vector<16x128xf32>
    %c15_i32 = arith.constant 15 : i32
    %12 = tpu.dynamic_rotate %9 by %c15_i32 dim 0 : vector<16x128xf32>, i32 -> vector<16x128xf32>
    %13 = arith.subf %12, %9 : vector<16x128xf32>
    %14 = arith.addf %11, %13 : vector<16x128xf32>
    %c0_8 = arith.constant 0 : index
    %c0_9 = arith.constant 0 : index
    %15 = vector.load %arg3[%c0_8, %c0_9] : memref<16x128xf32, #tpu.memory_space<vmem>>, vector<16x128xf32>
    tpu.vector_store %arg3[%c0_8, %c0_9], %14 {strides = array<i32>} : memref<16x128xf32, #tpu.memory_space<vmem>>, vector<16x128xf32>,
    return
  }
}

module attributes {stable_mosaic.version = 11 : i64} {
  func.func @_combine_div_kernel(%arg0: memref<2x16x128xf32, #tpu.memory_space<vmem>>, %arg1: memref<2x16x128xf32, #tpu.memory_space<vmem>>, %arg2: memref<2x16x128xf32, #tpu.memory_space<vmem>>, %arg3: memref<2x16x128xf32, #tpu.memory_space<vmem>>, %arg4: memref<2x16x128xf32, #tpu.memory_space<vmem>>, %arg5: memref<2x16x128xf32, #tpu.memory_space<vmem>>, %arg6: memref<16x128xf32, #tpu.memory_space<vmem>>) attributes {dimension_semantics = [], scalar_prefetch = 0 : i64, scratch_operands = 0 : i64, tpu.core_type = #tpu.core_type<tc>} {
    %c0 = arith.constant 0 : index
    %c0_0 = arith.constant 0 : index
    %c0_1 = arith.constant 0 : index
    %0 = vector.load %arg0[%c0, %c0_0, %c0_1] : memref<2x16x128xf32, #tpu.memory_space<vmem>>, vector<2x16x128xf32>
    %c0_2 = arith.constant 0 : index
    %c0_3 = arith.constant 0 : index
    %c0_4 = arith.constant 0 : index
    %1 = vector.load %arg1[%c0_2, %c0_3, %c0_4] : memref<2x16x128xf32, #tpu.memory_space<vmem>>, vector<2x16x128xf32>
    %cst = arith.constant 0.00166666671 : f32
    %2 = vector.broadcast %cst : f32 to vector<2x16x128xf32>
    %3 = arith.mulf %2, %1 : vector<2x16x128xf32>
    %4 = arith.addf %0, %3 : vector<2x16x128xf32>
    %c0_5 = arith.constant 0 : index
    %c0_6 = arith.constant 0 : index
    %c0_7 = arith.constant 0 : index
    %5 = vector.load %arg2[%c0_5, %c0_6, %c0_7] : memref<2x16x128xf32, #tpu.memory_space<vmem>>, vector<2x16x128xf32>
    %cst_8 = arith.constant 0.00333333341 : f32
    %6 = vector.broadcast %cst_8 : f32 to vector<2x16x128xf32>
    %7 = arith.mulf %6, %5 : vector<2x16x128xf32>
    %8 = arith.addf %4, %7 : vector<2x16x128xf32>
    %c0_9 = arith.constant 0 : index
    %c0_10 = arith.constant 0 : index
    %c0_11 = arith.constant 0 : index
    %9 = vector.load %arg3[%c0_9, %c0_10, %c0_11] : memref<2x16x128xf32, #tpu.memory_space<vmem>>, vector<2x16x128xf32>
    %cst_12 = arith.constant 0.00333333341 : f32
    %10 = vector.broadcast %cst_12 : f32 to vector<2x16x128xf32>
    %11 = arith.mulf %10, %9 : vector<2x16x128xf32>
    %12 = arith.addf %8, %11 : vector<2x16x128xf32>
    %c0_13 = arith.constant 0 : index
    %c0_14 = arith.constant 0 : index
    %c0_15 = arith.constant 0 : index
    %13 = vector.load %arg4[%c0_13, %c0_14, %c0_15] : memref<2x16x128xf32, #tpu.memory_space<vmem>>, vector<2x16x128xf32>
    %cst_16 = arith.constant 0.00166666671 : f32
    %14 = vector.broadcast %cst_16 : f32 to vector<2x16x128xf32>
    %15 = arith.mulf %14, %13 : vector<2x16x128xf32>
    %16 = arith.addf %12, %15 : vector<2x16x128xf32>
    %c0_17 = arith.constant 0 : index
    %c0_18 = arith.constant 0 : index
    %c0_19 = arith.constant 0 : index
    %17 = vector.load %arg5[%c0_17, %c0_18, %c0_19] : memref<2x16x128xf32, #tpu.memory_space<vmem>>, vector<2x16x128xf32>
    tpu.vector_store %arg5[%c0_17, %c0_18, %c0_19], %16 {strides = array<i32>} : memref<2x16x128xf32, #tpu.memory_space<vmem>>, vector<2x16x128xf32>,
    %18 = vector.extract_strided_slice %16 {offsets = [0, 0, 0], sizes = [1, 16, 128], strides = [1, 1, 1]} : vector<2x16x128xf32> to vector<1x16x128xf32>
    %19 = vector.shape_cast %18 : vector<1x16x128xf32> to vector<16x128xf32>
    %20 = vector.extract_strided_slice %16 {offsets = [1, 0, 0], sizes = [1, 16, 128], strides = [1, 1, 1]} : vector<2x16x128xf32> to vector<1x16x128xf32>
    %21 = vector.shape_cast %20 : vector<1x16x128xf32> to vector<16x128xf32>
    %c127_i32 = arith.constant 127 : i32
    %22 = tpu.dynamic_rotate %19 by %c127_i32 dim 1 : vector<16x128xf32>, i32 -> vector<16x128xf32>
    %23 = arith.subf %22, %19 : vector<16x128xf32>
    %c15_i32 = arith.constant 15 : i32
    %24 = tpu.dynamic_rotate %21 by %c15_i32 dim 0 : vector<16x128xf32>, i32 -> vector<16x128xf32>
    %25 = arith.subf %24, %21 : vector<16x128xf32>
    %26 = arith.addf %23, %25 : vector<16x128xf32>
    %c0_20 = arith.constant 0 : index
    %c0_21 = arith.constant 0 : index
    %27 = vector.load %arg6[%c0_20, %c0_21] : memref<16x128xf32, #tpu.memory_space<vmem>>, vector<16x128xf32>
    tpu.vector_store %arg6[%c0_20, %c0_21], %26 {strides = array<i32>} : memref<16x128xf32, #tpu.memory_space<vmem>>, vector<16x128xf32>,
    return
  }
}

module attributes {stable_mosaic.version = 11 : i64} {
  func.func @_combine_div_kernel(%arg0: memref<2x16x128xf32, #tpu.memory_space<vmem>>, %arg1: memref<2x16x128xf32, #tpu.memory_space<vmem>>, %arg2: memref<2x16x128xf32, #tpu.memory_space<vmem>>, %arg3: memref<16x128xf32, #tpu.memory_space<vmem>>) attributes {dimension_semantics = [], scalar_prefetch = 0 : i64, scratch_operands = 0 : i64, tpu.core_type = #tpu.core_type<tc>} {
    %c0 = arith.constant 0 : index
    %c0_0 = arith.constant 0 : index
    %c0_1 = arith.constant 0 : index
    %0 = vector.load %arg0[%c0, %c0_0, %c0_1] : memref<2x16x128xf32, #tpu.memory_space<vmem>>, vector<2x16x128xf32>
    %c0_2 = arith.constant 0 : index
    %c0_3 = arith.constant 0 : index
    %c0_4 = arith.constant 0 : index
    %1 = vector.load %arg1[%c0_2, %c0_3, %c0_4] : memref<2x16x128xf32, #tpu.memory_space<vmem>>, vector<2x16x128xf32>
    %cst = arith.constant 5.000000e-03 : f32
    %2 = vector.broadcast %cst : f32 to vector<2x16x128xf32>
    %3 = arith.mulf %2, %1 : vector<2x16x128xf32>
    %4 = arith.addf %0, %3 : vector<2x16x128xf32>
    %c0_5 = arith.constant 0 : index
    %c0_6 = arith.constant 0 : index
    %c0_7 = arith.constant 0 : index
    %5 = vector.load %arg2[%c0_5, %c0_6, %c0_7] : memref<2x16x128xf32, #tpu.memory_space<vmem>>, vector<2x16x128xf32>
    tpu.vector_store %arg2[%c0_5, %c0_6, %c0_7], %4 {strides = array<i32>} : memref<2x16x128xf32, #tpu.memory_space<vmem>>, vector<2x16x128xf32>,
    %6 = vector.extract_strided_slice %4 {offsets = [0, 0, 0], sizes = [1, 16, 128], strides = [1, 1, 1]} : vector<2x16x128xf32> to vector<1x16x128xf32>
    %7 = vector.shape_cast %6 : vector<1x16x128xf32> to vector<16x128xf32>
    %8 = vector.extract_strided_slice %4 {offsets = [1, 0, 0], sizes = [1, 16, 128], strides = [1, 1, 1]} : vector<2x16x128xf32> to vector<1x16x128xf32>
    %9 = vector.shape_cast %8 : vector<1x16x128xf32> to vector<16x128xf32>
    %c127_i32 = arith.constant 127 : i32
    %10 = tpu.dynamic_rotate %7 by %c127_i32 dim 1 : vector<16x128xf32>, i32 -> vector<16x128xf32>
    %11 = arith.subf %10, %7 : vector<16x128xf32>
    %c15_i32 = arith.constant 15 : i32
    %12 = tpu.dynamic_rotate %9 by %c15_i32 dim 0 : vector<16x128xf32>, i32 -> vector<16x128xf32>
    %13 = arith.subf %12, %9 : vector<16x128xf32>
    %14 = arith.addf %11, %13 : vector<16x128xf32>
    %c0_8 = arith.constant 0 : index
    %c0_9 = arith.constant 0 : index
    %15 = vector.load %arg3[%c0_8, %c0_9] : memref<16x128xf32, #tpu.memory_space<vmem>>, vector<16x128xf32>
    tpu.vector_store %arg3[%c0_8, %c0_9], %14 {strides = array<i32>} : memref<16x128xf32, #tpu.memory_space<vmem>>, vector<16x128xf32>,
    return
  }
}

module attributes {stable_mosaic.version = 11 : i64} {
  func.func @_proj_only_kernel(%arg0: memref<2x16x128xf32, #tpu.memory_space<vmem>>, %arg1: memref<16x128xf32, #tpu.memory_space<vmem>>, %arg2: memref<2x16x128xf32, #tpu.memory_space<vmem>>) attributes {dimension_semantics = [], scalar_prefetch = 0 : i64, scratch_operands = 0 : i64, tpu.core_type = #tpu.core_type<tc>} {
    %c0 = arith.constant 0 : index
    %c0_0 = arith.constant 0 : index
    %0 = vector.load %arg1[%c0, %c0_0] : memref<16x128xf32, #tpu.memory_space<vmem>>, vector<16x128xf32>
    %c1_i32 = arith.constant 1 : i32
    %1 = tpu.dynamic_rotate %0 by %c1_i32 dim 1 : vector<16x128xf32>, i32 -> vector<16x128xf32>
    %2 = arith.subf %0, %1 : vector<16x128xf32>
    %c1_i32_1 = arith.constant 1 : i32
    %3 = tpu.dynamic_rotate %0 by %c1_i32_1 dim 0 : vector<16x128xf32>, i32 -> vector<16x128xf32>
    %4 = arith.subf %0, %3 : vector<16x128xf32>
    %c0_2 = arith.constant 0 : index
    %c0_3 = arith.constant 0 : index
    %c0_4 = arith.constant 0 : index
    %5 = vector.load %arg0[%c0_2, %c0_3, %c0_4] : memref<2x16x128xf32, #tpu.memory_space<vmem>>, vector<1x16x128xf32>
    %6 = vector.shape_cast %5 : vector<1x16x128xf32> to vector<16x128xf32>
    %7 = arith.subf %6, %2 : vector<16x128xf32>
    %c0_5 = arith.constant 0 : index
    %c0_6 = arith.constant 0 : index
    %c0_7 = arith.constant 0 : index
    %8 = vector.load %arg2[%c0_5, %c0_6, %c0_7] : memref<2x16x128xf32, #tpu.memory_space<vmem>>, vector<1x16x128xf32>
    %9 = vector.shape_cast %8 : vector<1x16x128xf32> to vector<16x128xf32>
    %10 = vector.shape_cast %7 : vector<16x128xf32> to vector<1x16x128xf32>
    tpu.vector_store %arg2[%c0_5, %c0_6, %c0_7], %10 {strides = array<i32>} : memref<2x16x128xf32, #tpu.memory_space<vmem>>, vector<1x16x128xf32>,
    %c1 = arith.constant 1 : index
    %c0_8 = arith.constant 0 : index
    %c0_9 = arith.constant 0 : index
    %11 = vector.load %arg0[%c1, %c0_8, %c0_9] : memref<2x16x128xf32, #tpu.memory_space<vmem>>, vector<1x16x128xf32>
    %12 = vector.shape_cast %11 : vector<1x16x128xf32> to vector<16x128xf32>
    %13 = arith.subf %12, %4 : vector<16x128xf32>
    %c1_10 = arith.constant 1 : index
    %c0_11 = arith.constant 0 : index
    %c0_12 = arith.constant 0 : index
    %14 = vector.load %arg2[%c1_10, %c0_11, %c0_12] : memref<2x16x128xf32, #tpu.memory_space<vmem>>, vector<1x16x128xf32>
    %15 = vector.shape_cast %14 : vector<1x16x128xf32> to vector<16x128xf32>
    %16 = vector.shape_cast %13 : vector<16x128xf32> to vector<1x16x128xf32>
    tpu.vector_store %arg2[%c1_10, %c0_11, %c0_12], %16 {strides = array<i32>} : memref<2x16x128xf32, #tpu.memory_space<vmem>>, vector<1x16x128xf32>,
    return
  }
}

</mosaic_0001>

<bundles_post_ra>
// kernel: step.10
= control target key start
LH: loop header
LB: loop body
LE: loop exit
PB: predicated region body
PF: predicated region fallthrough
CT: control target
= control target key end

     0   :  { %9 = vsyncpa [#allocation3], 0  ;;  %s107_s15 = smov [#allocation2]   ;;  %s108_s17 = smov 128   ;;  %s164_s0 = inlined_call_operand.hbm [shape: f32[2,16,128], index: 0, kind: input, shape index: {}]   ;;  %s165_s1 = inlined_call_operand.vmem [shape: f32[2,16,128], index: 1, kind: input, shape index: {}]   ;;  %s166_s2 = inlined_call_operand.vmem [shape: f32[2,16,128], index: 2, kind: output, shape index: {0}]   ;;  %s167_s3 = inlined_call_operand.vmem [shape: f32[16,128], index: 3, kind: output, shape index: {1}]  }
   0x1   :  { %s14_s14 = sshll.u32 %s164_s0, 4  ;;  %s16_s16 = sshll.u32 %s107_s15, 4  ;;  %s15_s14 = int_to_ptr.hbm [resolvable:$true] %s14_s14  ;;  %s17_s16 = int_to_ptr.vmem [resolvable:$true] %s16_s16 }
   0x2   :  { %s109_s18 = smov 8  }
   0x3   :  { %22 = dma.hbm_to_vmem [thread:$0]  %s15_s14, 512, %s17_s16, [#allocation3], %s108_s17, %s108_s17, %s109_s18  }
   0x4   :  { %105 = dma.done.wait [#allocation3], 512  }
   0x5   :  { %106 = vsyncadd [#allocation3], 4294966784  ;;  %v29_v0 = vld [vmem:[#allocation2] sm:$0xff]  ;;  %v30_v3 = vld [vmem:[#allocation2 + $0x8] sm:$0xff]  ;;  %s110_s26 = smov 127   ;;  %v57_v16 = vlaneseq }
   0x6   :  { %v33_v1 = vld [vmem:[%s165_s1] sm:$0xff]  ;;  %v34_v4 = vld [vmem:[%s165_s1 + $0x8] sm:$0xff]  ;;  %v31_v6 = vld [vmem:[#allocation2 + $0x10] sm:$0xff] }
   0x7   :  { %v37_v2 = vmul.f32 0.005, %v33_v1  ;;  %v38_v5 = vmul.f32 0.005, %v34_v4  ;;  %v35_v7 = vld [vmem:[%s165_s1 + $0x10] sm:$0xff]  ;;  %v36_v8 = vld [vmem:[%s165_s1 + $0x18] sm:$0xff] }
   0x8   :  { %v32_v10 = vld [vmem:[#allocation2 + $0x18] sm:$0xff]  ;;  %v39_v11 = vmul.f32 0.005, %v35_v7  ;;  %v40_v12 = vmul.f32 0.005, %v36_v8  ;;  %v58_v17 = vshrl.u32 %v57_v16, 7 }
   0x9   :  { %v41_v9 = vadd.f32 %v37_v2, %v29_v0  ;;  %v42_v13 = vadd.f32 %v38_v5, %v30_v3 }
   0xa   :  { %v43_v14 = vadd.f32 %v39_v11, %v31_v6  ;;  %v44_v15 = vadd.f32 %v40_v12, %v32_v10  ;;  %vm59_vm0 = vcmp.lt.s32.totalorder %v58_v17, 7 }
   0xb   :  { %49 = vrot.lane.b32.xlu0 %v41_v9, %s110_s26  ;;  %45 = vst [vmem:[%s166_s2] sm:$0xff] %v41_v9 }
   0xc   :  { %46 = vst [vmem:[%s166_s2 + $0x8] sm:$0xff] %v42_v13  ;;  %v55_v18 = vrot.slane %v43_v14, 1  ;;  %v56_v19 = vrot.slane %v44_v15, 1 }
   0xd   :  { %47 = vst [vmem:[%s166_s2 + $0x10] sm:$0xff] %v43_v14 }
   0xe   :  { %48 = vst [vmem:[%s166_s2 + $0x18] sm:$0xff] %v44_v15  ;;  %v60_v20 = vsel %vm59_vm0, %v55_v18, %v56_v19  ;;  %v61_v25 = vsel %vm59_vm0, %v56_v19, %v55_v18 }
   0xf   :  { %v62_v21 = vsub.f32 %v60_v20, %v43_v14  ;;  %v63_v26 = vsub.f32 %v61_v25, %v44_v15 }
  0x13   :  { %51 = vrot.lane.b32.xlu0 %v42_v13, %s110_s26 }
  0x7d   :  { %v50_v22 = vpop.permute.xlu0 %49 }
  0x7e   :  { %v53_v23 = vsub.f32 %v50_v22, %v41_v9 }
  0x80   :  { %v64_v24 = vadd.f32 %v62_v21, %v53_v23 }
  0x82   :  { %66 = vst [vmem:[%s167_s3] sm:$0xff] %v64_v24 }
  0x85   :  { %v52_v27 = vpop.permute.xlu0 %51 }
  0x86   :  { %v54_v28 = vsub.f32 %v52_v27, %v42_v13 }
  0x88   :  { %v65_v29 = vadd.f32 %v63_v26, %v54_v28 }
  0x8a   :  { %67 = vst [vmem:[%s167_s3 + $0x8] sm:$0xff] %v65_v29 }
  0x8b   :  { %76 = vsyncpa [#allocation3], 1 }

// kernel: step.9
= control target key start
LH: loop header
LB: loop body
LE: loop exit
PB: predicated region body
PF: predicated region fallthrough
CT: control target
= control target key end

     0   :  { %6 = vsyncpa [#allocation3], 0  ;;  %s131_s9 = smov [#allocation2]   ;;  %s132_s11 = smov 128   ;;  %s169_s0 = inlined_call_operand.hbm [shape: f32[2,16,128], index: 0, kind: input, shape index: {}]   ;;  %s170_s1 = inlined_call_operand.vmem [shape: f32[2,16,128], index: 1, kind: output, shape index: {}]  }
   0x1   :  { %s11_s8 = sshll.u32 %s169_s0, 4  ;;  %s13_s10 = sshll.u32 %s131_s9, 4  ;;  %s12_s8 = int_to_ptr.hbm [resolvable:$true] %s11_s8  ;;  %s14_s10 = int_to_ptr.vmem [resolvable:$true] %s13_s10 }
   0x2   :  { %s133_s12 = smov 8  }
   0x3   :  { %19 = dma.hbm_to_vmem [thread:$0]  %s12_s8, 512, %s14_s10, [#allocation3], %s132_s11, %s132_s11, %s133_s12  }
   0x4   :  { %129 = dma.done.wait [#allocation3], 512  }
   0x5   :  { %130 = vsyncadd [#allocation3], 4294966784  ;;  %v26_v0 = vld [vmem:[#allocation2 + $0x10] sm:$0xff]  ;;  %v24_v1 = vld [vmem:[#allocation2] sm:$0xff]  ;;  %s134_s13 = smov 1   ;;  %s135_s14 = smov 127   ;;  %v30_v4 = vlaneseq }
   0x6   :  { %72 = vrot.lane.b32.xlu1 %v26_v0, %s134_s13  ;;  %42 = vrot.lane.b32.xlu0 %v24_v1, %s134_s13  ;;  %v27_v2 = vld [vmem:[#allocation2 + $0x18] sm:$0xff]  ;;  %v25_v3 = vld [vmem:[#allocation2 + $0x8] sm:$0xff]  ;;  %v28_v8 = vrot.slane %v24_v1, 7  ;;  %v35_v9 = vrot.slane %v24_v1, 1  ;;  %v54_v17 = vmul.f32 4.0, %v24_v1  ;;  %v62_v23 = vrot.slane %v26_v0, 7 }
   0x7   :  { %48 = vrot.lane.b32.xlu2 %v24_v1, %s135_s14  ;;  %v31_v5 = vshrl.u32 %v30_v4, 7  ;;  %v29_v6 = vrot.slane %v25_v3, 7  ;;  %v36_v7 = vrot.slane %v25_v3, 1  ;;  %v63_v21 = vrot.slane %v27_v2, 7 }
   0x8   :  { %v67_v22 = vrot.slane %v27_v2, 1  ;;  %v66_v24 = vrot.slane %v26_v0, 1  ;;  %v55_v36 = vmul.f32 4.0, %v25_v3  ;;  %v85_v41 = vmul.f32 4.0, %v27_v2 }
   0x9   :  { %vm32_vm0 = vcmp.lt.s32.totalorder %v31_v5, 1  ;;  %vm37_vm1 = vcmp.lt.s32.totalorder %v31_v5, 7  ;;  %v84_v45 = vmul.f32 4.0, %v26_v0 }
   0xa   :  { %v34_v10 = vsel %vm32_vm0, %v29_v6, %v28_v8  ;;  %v38_v11 = vsel %vm37_vm1, %v35_v9, %v36_v7  ;;  %v33_v18 = vsel %vm32_vm0, %v28_v8, %v29_v6  ;;  %v39_v19 = vsel %vm37_vm1, %v36_v7, %v35_v9 }
   0xb   :  { %v40_v12 = vadd.f32 %v38_v11, %v34_v10  ;;  %v41_v26 = vadd.f32 %v39_v19, %v33_v18  ;;  %v65_v29 = vsel %vm32_vm0, %v63_v21, %v62_v23  ;;  %v68_v30 = vsel %vm37_vm1, %v66_v24, %v67_v22 }
   0xc   :  { %v64_v32 = vsel %vm32_vm0, %v62_v23, %v63_v21  ;;  %v69_v33 = vsel %vm37_vm1, %v67_v22, %v66_v24  ;;  %v70_v37 = vadd.f32 %v68_v30, %v65_v29 }
   0xd   :  { %v71_v38 = vadd.f32 %v69_v33, %v64_v32 }
   0xe   :  { %74 = vrot.lane.b32.xlu1 %v27_v2, %s134_s13  ;;  %44 = vrot.lane.b32.xlu0 %v25_v3, %s134_s13 }
   0xf   :  { %50 = vrot.lane.b32.xlu2 %v25_v3, %s135_s14 }
  0x16   :  { %80 = vrot.lane.b32.xlu1 %v27_v2, %s135_s14  ;;  %78 = vrot.lane.b32.xlu0 %v26_v0, %s135_s14 }
  0x61   :  { %v49_v13 = vpop.permute.xlu2 %48 }
  0x69   :  { %v51_v28 = vpop.permute.xlu2 %50 }
  0x78   :  { %v73_v14 = vpop.permute.xlu1 %72  ;;  %v43_v15 = vpop.permute.xlu0 %42 }
  0x79   :  { %v46_v16 = vadd.f32 %v43_v15, %v40_v12  ;;  %v76_v42 = vadd.f32 %v73_v14, %v70_v37 }
  0x7b   :  { %v52_v20 = vadd.f32 %v49_v13, %v46_v16 }
  0x7d   :  { %v56_v25 = vsub.f32 %v52_v20, %v54_v17 }
  0x7f   :  { %v58_v27 = vmul.f32 0.05, %v56_v25 }
  0x80   :  { %v75_v31 = vpop.permute.xlu1 %74  ;;  %v45_v34 = vpop.permute.xlu0 %44 }
  0x81   :  { %60 = vst [vmem:[%s170_s1] sm:$0xff] %v58_v27  ;;  %v47_v35 = vadd.f32 %v45_v34, %v41_v26  ;;  %v77_v43 = vadd.f32 %v75_v31, %v71_v38 }
  0x83   :  { %v53_v39 = vadd.f32 %v51_v28, %v47_v35 }
  0x85   :  { %v57_v40 = vsub.f32 %v53_v39, %v55_v36 }
  0x87   :  { %v59_v44 = vmul.f32 0.05, %v57_v40 }
  0x88   :  { %v81_v46 = vpop.permute.xlu1 %80  ;;  %v79_v47 = vpop.permute.xlu0 %78 }
  0x89   :  { %61 = vst [vmem:[%s170_s1 + $0x8] sm:$0xff] %v59_v44  ;;  %v83_v48 = vadd.f32 %v81_v46, %v77_v43  ;;  %v82_v49 = vadd.f32 %v79_v47, %v76_v42 }
  0x8b   :  { %v87_v50 = vsub.f32 %v83_v48, %v85_v41  ;;  %v86_v51 = vsub.f32 %v82_v49, %v84_v45 }
  0x8d   :  { %v89_v52 = vmul.f32 0.05, %v87_v50  ;;  %v88_v53 = vmul.f32 0.05, %v86_v51 }
  0x8f   :  { %99 = vst [vmem:[%s170_s1 + $0x18] sm:$0xff] %v89_v52 }
  0x90   :  { %98 = vst [vmem:[%s170_s1 + $0x10] sm:$0xff] %v88_v53 }
  0x91   :  { %97 = vsyncpa [#allocation3], 1 }

// kernel: step.11
= control target key start
LH: loop header
LB: loop body
LE: loop exit
PB: predicated region body
PF: predicated region fallthrough
CT: control target
= control target key end

     0   :  { %v24_v2 = vlaneseq  ;;  %s164_s16 = smov 1   ;;  %s264_s0 = inlined_call_operand.vmem [shape: f32[2,16,128], index: 0, kind: input, shape index: {}]   ;;  %s265_s1 = inlined_call_operand.vmem [shape: f32[16,128], index: 1, kind: input, shape index: {}]   ;;  %s266_s2 = inlined_call_operand.hbm [shape: f32[2,16,128], index: 2, kind: output, shape index: {0}]   ;;  %s267_s3 = inlined_call_operand.vmem [shape: f32[2,16,128], index: 3, kind: output, shape index: {1}]  }
   0x1   :  { %v14_v0 = vld [vmem:[%s265_s1] sm:$0xff]  ;;  %v15_v1 = vld [vmem:[%s265_s1 + $0x8] sm:$0xff] }
   0x2   :  { %16 = vrot.lane.b32.xlu0 %v14_v0, %s164_s16  ;;  %v22_v3 = vrot.slane %v14_v0, 7  ;;  %v23_v4 = vrot.slane %v15_v1, 7 }
   0x3   :  { %9 = vsyncpa [#allocation3], 0  ;;  %v196_v5 = vshrl.u32 %v24_v2, 7  ;;  %v129_v6 = vld [vmem:[%s264_s0 + $0x10] sm:$0xff]  ;;  %v130_v9 = vld [vmem:[%s264_s0 + $0x18] sm:$0xff]  ;;  %s165_s20 = smov 127  }
   0x4   :  { %v31_v14 = vld [vmem:[%s264_s0] sm:$0xff]  ;;  %v32_v18 = vld [vmem:[%s264_s0 + $0x8] sm:$0xff]  ;;  %s166_s25 = smov [#allocation2]   ;;  %s113_s29 = sshll.u32 %s266_s2, 4  ;;  %s114_s29 = int_to_ptr.hbm [resolvable:$true] %s113_s29 }
   0x5   :  { %vm26_vm0 = vcmp.lt.s32.totalorder %v196_v5, 1  ;;  %vm51_vm1 = vcmp.lt.s32.totalorder %v196_v5, 7  ;;  %s111_s26 = sshll.u32 %s166_s25, 4  ;;  %s167_s0 = smov 128   ;;  %s112_s26 = int_to_ptr.vmem [resolvable:$true] %s111_s26 }
   0x6   :  { %v27_v7 = vsel %vm26_vm0, %v22_v3, %v23_v4  ;;  %v28_v8 = vsel %vm26_vm0, %v23_v4, %v22_v3  ;;  %s168_s2 = smov 8  }
   0x7   :  { %v29_v10 = vsub.f32 %v14_v0, %v28_v8  ;;  %v30_v11 = vsub.f32 %v15_v1, %v27_v7 }
   0x9   :  { %v38_v12 = vsub.f32 %v129_v6, %v29_v10  ;;  %v210_v13 = vsub.f32 %v130_v9, %v30_v11 }
   0xa   :  { %18 = vrot.lane.b32.xlu0 %v15_v1, %s164_s16 }
   0xb   :  { %43 = vst [vmem:[#allocation2 + $0x10] sm:$0xff] %v38_v12  ;;  %86 = vrot.lane.b32.xlu2 %v38_v12, %s164_s16  ;;  %v76_v33 = vrot.slane %v38_v12, 7  ;;  %v77_v34 = vrot.slane %v210_v13, 7  ;;  %v80_v35 = vrot.slane %v38_v12, 1  ;;  %v81_v36 = vrot.slane %v210_v13, 1 }
   0xc   :  { %44 = vst [vmem:[#allocation2 + $0x18] sm:$0xff] %v210_v13  ;;  %v98_v43 = vmul.f32 4.0, %v38_v12  ;;  %v99_v58 = vmul.f32 4.0, %v210_v13 }
   0xd   :  { %v79_v37 = vsel %vm26_vm0, %v77_v34, %v76_v33  ;;  %v82_v38 = vsel %vm51_vm1, %v80_v35, %v81_v36  ;;  %v78_v47 = vsel %vm26_vm0, %v76_v33, %v77_v34  ;;  %v83_v48 = vsel %vm51_vm1, %v81_v36, %v80_v35 }
   0xe   :  { %v84_v40 = vadd.f32 %v82_v38, %v79_v37  ;;  %v85_v51 = vadd.f32 %v83_v48, %v78_v47 }
  0x13   :  { %88 = vrot.lane.b32.xlu2 %v210_v13, %s164_s16 }
  0x1b   :  { %92 = vrot.lane.b32.xlu2 %v38_v12, %s165_s20 }
  0x65   :  { %v87_v32 = vpop.permute.xlu2 %86 }
  0x66   :  { %v90_v41 = vadd.f32 %v87_v32, %v84_v40 }
  0x6d   :  { %v89_v39 = vpop.permute.xlu2 %88 }
  0x6e   :  { %v91_v55 = vadd.f32 %v89_v39, %v85_v51 }
  0x74   :  { %v17_v15 = vpop.permute.xlu0 %16 }
  0x75   :  { %v20_v16 = vsub.f32 %v14_v0, %v17_v15  ;;  %v93_v42 = vpop.permute.xlu2 %92 }
  0x76   :  { %v96_v44 = vadd.f32 %v93_v42, %v90_v41 }
  0x77   :  { %v33_v17 = vsub.f32 %v31_v14, %v20_v16 }
  0x78   :  { %v100_v45 = vsub.f32 %v96_v44, %v98_v43 }
  0x79   :  { %40 = vst [vmem:[#allocation2] sm:$0xff] %v33_v17  ;;  %62 = vrot.lane.b32.xlu0 %v33_v17, %s165_s20  ;;  %56 = vrot.lane.b32.xlu1 %v33_v17, %s164_s16  ;;  %v45_v22 = vrot.slane %v33_v17, 7  ;;  %v49_v24 = vrot.slane %v33_v17, 1  ;;  %v68_v53 = vmul.f32 4.0, %v33_v17 }
  0x7a   :  { %v102_v46 = vmul.f32 0.05, %v100_v45 }
  0x7c   :  { %v19_v19 = vpop.permute.xlu0 %18  ;;  %131 = vst [vmem:[%s267_s3 + $0x10] sm:$0xff] %v102_v46 }
  0x7d   :  { %v21_v20 = vsub.f32 %v15_v1, %v19_v19 }
  0x7f   :  { %v34_v21 = vsub.f32 %v32_v18, %v21_v20 }
  0x81   :  { %41 = vst [vmem:[#allocation2 + $0x8] sm:$0xff] %v34_v21  ;;  %58 = vrot.lane.b32.xlu1 %v34_v21, %s164_s16  ;;  %94 = vrot.lane.b32.xlu0 %v210_v13, %s165_s20  ;;  %v46_v23 = vrot.slane %v34_v21, 7  ;;  %v50_v25 = vrot.slane %v34_v21, 1  ;;  %v69_v3 = vmul.f32 4.0, %v34_v21 }
  0x82   :  { %119 = dma.vmem_to_hbm [thread:$0]  %s112_s26, 512, %s114_s29, [#allocation3], %s167_s0, %s167_s0, %s168_s2  }
  0x83   :  { %v48_v26 = vsel %vm26_vm0, %v46_v23, %v45_v22  ;;  %v52_v27 = vsel %vm51_vm1, %v49_v24, %v50_v25  ;;  %v47_v28 = vsel %vm26_vm0, %v45_v22, %v46_v23  ;;  %v53_v29 = vsel %vm51_vm1, %v50_v25, %v49_v24 }
  0x84   :  { %v54_v30 = vadd.f32 %v52_v27, %v48_v26  ;;  %v55_v31 = vadd.f32 %v53_v29, %v47_v28 }
  0x89   :  { %64 = vrot.lane.b32.xlu1 %v34_v21, %s165_s20 }
  0xeb   :  { %v57_v49 = vpop.permute.xlu1 %56  ;;  %v63_v50 = vpop.permute.xlu0 %62 }
  0xec   :  { %v60_v52 = vadd.f32 %v57_v49, %v54_v30 }
  0xee   :  { %v66_v54 = vadd.f32 %v63_v50, %v60_v52 }
  0xf0   :  { %v70_v56 = vsub.f32 %v66_v54, %v68_v53 }
  0xf2   :  { %v72_v57 = vmul.f32 0.05, %v70_v56 }
  0xf3   :  { %v59_v59 = vpop.permute.xlu1 %58  ;;  %v95_v60 = vpop.permute.xlu0 %94 }
  0xf4   :  { %74 = vst [vmem:[%s267_s3] sm:$0xff] %v72_v57  ;;  %v97_v61 = vadd.f32 %v95_v60, %v91_v55  ;;  %v61_v0 = vadd.f32 %v59_v59, %v55_v31 }
  0xf6   :  { %v101_v62 = vsub.f32 %v97_v61, %v99_v58 }
  0xf8   :  { %v103_v63 = vmul.f32 0.05, %v101_v62 }
  0xfa   :  { %132 = vst [vmem:[%s267_s3 + $0x18] sm:$0xff] %v103_v63 }
  0xfb   :  { %v65_v1 = vpop.permute.xlu1 %64 }
  0xfc   :  { %v67_v2 = vadd.f32 %v65_v1, %v61_v0 }
  0xfe   :  { %v71_v4 = vsub.f32 %v67_v2, %v69_v3 }
 0x100   :  { %v73_v5 = vmul.f32 0.05, %v71_v4 }
 0x102   :  { %75 = vst [vmem:[%s267_s3 + $0x8] sm:$0xff] %v73_v5 }
 0x103   :  { %162 = dma.done.wait [#allocation3], 512  }
 0x104   :  { %163 = vsyncadd [#allocation3], 4294966784 }
 0x105   :  { %128 = vsyncpa [#allocation3], 1 }

// kernel: step.14
= control target key start
LH: loop header
LB: loop body
LE: loop exit
PB: predicated region body
PF: predicated region fallthrough
CT: control target
= control target key end

     0   :  { %s61_s28 = smov 127   ;;  %v41_v16 = vlaneseq  ;;  %s124_s0 = inlined_call_operand.vmem [shape: f32[2,16,128], index: 0, kind: input, shape index: {}]   ;;  %s125_s1 = inlined_call_operand.vmem [shape: f32[2,16,128], index: 1, kind: input, shape index: {}]   ;;  %s126_s2 = inlined_call_operand.vmem [shape: f32[2,16,128], index: 2, kind: output, shape index: {0}]   ;;  %s127_s3 = inlined_call_operand.vmem [shape: f32[16,128], index: 3, kind: output, shape index: {1}]  }
   0x1   :  { %v13_v0 = vld [vmem:[%s124_s0] sm:$0xff]  ;;  %v20_v2 = vld [vmem:[%s125_s1 + $0x18] sm:$0xff]  ;;  %v14_v4 = vld [vmem:[%s124_s0 + $0x8] sm:$0xff] }
   0x2   :  { %v17_v1 = vld [vmem:[%s125_s1] sm:$0xff]  ;;  %v18_v5 = vld [vmem:[%s125_s1 + $0x8] sm:$0xff]  ;;  %v24_v6 = vmul.f32 0.01, %v20_v2  ;;  %v15_v8 = vld [vmem:[%s124_s0 + $0x10] sm:$0xff]  ;;  %v42_v17 = vshrl.u32 %v41_v16, 7 }
   0x3   :  { %v21_v3 = vmul.f32 0.01, %v17_v1  ;;  %v22_v7 = vmul.f32 0.01, %v18_v5  ;;  %v19_v9 = vld [vmem:[%s125_s1 + $0x10] sm:$0xff]  ;;  %v16_v10 = vld [vmem:[%s124_s0 + $0x18] sm:$0xff] }
   0x4   :  { %v23_v12 = vmul.f32 0.01, %v19_v9  ;;  %v28_v15 = vadd.f32 %v24_v6, %v16_v10  ;;  %vm43_vm0 = vcmp.lt.s32.totalorder %v42_v17, 7 }
   0x5   :  { %v25_v11 = vadd.f32 %v21_v3, %v13_v0  ;;  %v26_v13 = vadd.f32 %v22_v7, %v14_v4 }
   0x6   :  { %v27_v14 = vadd.f32 %v23_v12, %v15_v8  ;;  %32 = vst [vmem:[%s126_s2 + $0x18] sm:$0xff] %v28_v15  ;;  %v40_v19 = vrot.slane %v28_v15, 1 }
   0x7   :  { %33 = vrot.lane.b32.xlu0 %v25_v11, %s61_s28  ;;  %29 = vst [vmem:[%s126_s2] sm:$0xff] %v25_v11 }
   0x8   :  { %30 = vst [vmem:[%s126_s2 + $0x8] sm:$0xff] %v26_v13  ;;  %v39_v18 = vrot.slane %v27_v14, 1 }
   0x9   :  { %31 = vst [vmem:[%s126_s2 + $0x10] sm:$0xff] %v27_v14 }
   0xa   :  { %v44_v20 = vsel %vm43_vm0, %v39_v18, %v40_v19  ;;  %v45_v25 = vsel %vm43_vm0, %v40_v19, %v39_v18 }
   0xb   :  { %v46_v21 = vsub.f32 %v44_v20, %v27_v14  ;;  %v47_v26 = vsub.f32 %v45_v25, %v28_v15 }
   0xf   :  { %35 = vrot.lane.b32.xlu0 %v26_v13, %s61_s28 }
  0x79   :  { %v34_v22 = vpop.permute.xlu0 %33 }
  0x7a   :  { %v37_v23 = vsub.f32 %v34_v22, %v25_v11 }
  0x7c   :  { %v48_v24 = vadd.f32 %v46_v21, %v37_v23 }
  0x7e   :  { %50 = vst [vmem:[%s127_s3] sm:$0xff] %v48_v24 }
  0x81   :  { %v36_v27 = vpop.permute.xlu0 %35 }
  0x82   :  { %v38_v28 = vsub.f32 %v36_v27, %v26_v13 }
  0x84   :  { %v49_v29 = vadd.f32 %v47_v26, %v38_v28 }
  0x86   :  { %51 = vst [vmem:[%s127_s3 + $0x8] sm:$0xff] %v49_v29 }

// kernel: step.16
= control target key start
LH: loop header
LB: loop body
LE: loop exit
PB: predicated region body
PF: predicated region fallthrough
CT: control target
= control target key end

     0   :  { %v86_v52 = vlaneseq  ;;  %s220_s0 = inlined_call_operand.vmem [shape: f32[2,16,128], index: 0, kind: input, shape index: {}]   ;;  %s221_s1 = inlined_call_operand.vmem [shape: f32[2,16,128], index: 1, kind: input, shape index: {}]   ;;  %s222_s2 = inlined_call_operand.vmem [shape: f32[2,16,128], index: 2, kind: input, shape index: {}]   ;;  %s223_s3 = inlined_call_operand.vmem [shape: f32[2,16,128], index: 3, kind: input, shape index: {}]   ;;  %s224_s4 = inlined_call_operand.vmem [shape: f32[2,16,128], index: 4, kind: input, shape index: {}]   ;;  %s225_s5 = inlined_call_operand.vmem [shape: f32[2,16,128], index: 5, kind: output, shape index: {0}]   ;;  %s226_s6 = inlined_call_operand.vmem [shape: f32[16,128], index: 6, kind: output, shape index: {1}]  }
   0x1   :  { %v22_v0 = vld [vmem:[%s220_s0] sm:$0xff]  ;;  %v25_v1 = vld [vmem:[%s220_s0 + $0x18] sm:$0xff]  ;;  %v23_v17 = vld [vmem:[%s220_s0 + $0x8] sm:$0xff] }
   0x2   :  { %v26_v2 = vld [vmem:[%s221_s1] sm:$0xff]  ;;  %v29_v3 = vld [vmem:[%s221_s1 + $0x18] sm:$0xff]  ;;  %v27_v22 = vld [vmem:[%s221_s1 + $0x8] sm:$0xff]  ;;  %v87_v53 = vshrl.u32 %v86_v52, 7 }
   0x3   :  { %v30_v4 = vmul.f32 0.0016666667, %v26_v2  ;;  %v38_v5 = vld [vmem:[%s222_s2] sm:$0xff]  ;;  %v41_v6 = vld [vmem:[%s222_s2 + $0x18] sm:$0xff]  ;;  %v33_v7 = vmul.f32 0.0016666667, %v29_v3 }
   0x4   :  { %v42_v8 = vmul.f32 0.0033333334, %v38_v5  ;;  %v45_v9 = vmul.f32 0.0033333334, %v41_v6  ;;  %v50_v11 = vld [vmem:[%s223_s3] sm:$0xff]  ;;  %v53_v12 = vld [vmem:[%s223_s3 + $0x18] sm:$0xff] }
   0x5   :  { %v34_v10 = vadd.f32 %v30_v4, %v22_v0  ;;  %v62_v13 = vld [vmem:[%s224_s4] sm:$0xff]  ;;  %v54_v14 = vmul.f32 0.0033333334, %v50_v11  ;;  %v57_v15 = vmul.f32 0.0033333334, %v53_v12  ;;  %v65_v16 = vld [vmem:[%s224_s4 + $0x18] sm:$0xff]  ;;  %v37_v18 = vadd.f32 %v33_v7, %v25_v1 }
   0x6   :  { %v66_v20 = vmul.f32 0.0016666667, %v62_v13  ;;  %v69_v21 = vmul.f32 0.0016666667, %v65_v16  ;;  %v39_v23 = vld [vmem:[%s222_s2 + $0x8] sm:$0xff]  ;;  %v24_v30 = vld [vmem:[%s220_s0 + $0x10] sm:$0xff] }
   0x7   :  { %v46_v19 = vadd.f32 %v42_v8, %v34_v10  ;;  %v31_v24 = vmul.f32 0.0016666667, %v27_v22  ;;  %v43_v25 = vmul.f32 0.0033333334, %v39_v23  ;;  %v51_v26 = vld [vmem:[%s223_s3 + $0x8] sm:$0xff]  ;;  %v49_v28 = vadd.f32 %v45_v9, %v37_v18  ;;  %v28_v31 = vld [vmem:[%s221_s1 + $0x10] sm:$0xff] }
   0x8   :  { %v63_v27 = vld [vmem:[%s224_s4 + $0x8] sm:$0xff]  ;;  %v55_v33 = vmul.f32 0.0033333334, %v51_v26  ;;  %v32_v34 = vmul.f32 0.0016666667, %v28_v31  ;;  %v40_v35 = vld [vmem:[%s222_s2 + $0x10] sm:$0xff] }
   0x9   :  { %v58_v29 = vadd.f32 %v54_v14, %v46_v19  ;;  %v35_v32 = vadd.f32 %v31_v24, %v23_v17  ;;  %v52_v36 = vld [vmem:[%s223_s3 + $0x10] sm:$0xff]  ;;  %v61_v37 = vadd.f32 %v57_v15, %v49_v28  ;;  %v67_v39 = vmul.f32 0.0016666667, %v63_v27  ;;  %s106_s1 = smov 127  }
   0xa   :  { %v44_v40 = vmul.f32 0.0033333334, %v40_v35  ;;  %v64_v41 = vld [vmem:[%s224_s4 + $0x10] sm:$0xff]  ;;  %v36_v43 = vadd.f32 %v32_v34, %v24_v30  ;;  %v56_v44 = vmul.f32 0.0033333334, %v52_v36  ;;  %vm88_vm0 = vcmp.lt.s32.totalorder %v87_v53, 7 }
   0xb   :  { %v70_v38 = vadd.f32 %v66_v20, %v58_v29  ;;  %v47_v42 = vadd.f32 %v43_v25, %v35_v32  ;;  %v73_v45 = vadd.f32 %v69_v21, %v61_v37  ;;  %v68_v48 = vmul.f32 0.0016666667, %v64_v41 }
   0xc   :  { %v48_v47 = vadd.f32 %v44_v40, %v36_v43 }
   0xd   :  { %78 = vrot.lane.b32.xlu0 %v70_v38, %s106_s1  ;;  %74 = vst [vmem:[%s225_s5] sm:$0xff] %v70_v38  ;;  %v59_v46 = vadd.f32 %v55_v33, %v47_v42  ;;  %v85_v55 = vrot.slane %v73_v45, 1 }
   0xe   :  { %77 = vst [vmem:[%s225_s5 + $0x18] sm:$0xff] %v73_v45  ;;  %v60_v50 = vadd.f32 %v56_v44, %v48_v47 }
   0xf   :  { %v71_v49 = vadd.f32 %v67_v39, %v59_v46 }
  0x10   :  { %v72_v51 = vadd.f32 %v68_v48, %v60_v50 }
  0x11   :  { %75 = vst [vmem:[%s225_s5 + $0x8] sm:$0xff] %v71_v49 }
  0x12   :  { %76 = vst [vmem:[%s225_s5 + $0x10] sm:$0xff] %v72_v51  ;;  %v84_v54 = vrot.slane %v72_v51, 1 }
  0x14   :  { %v89_v56 = vsel %vm88_vm0, %v84_v54, %v85_v55  ;;  %v90_v61 = vsel %vm88_vm0, %v85_v55, %v84_v54 }
  0x15   :  { %80 = vrot.lane.b32.xlu0 %v71_v49, %s106_s1  ;;  %v91_v57 = vsub.f32 %v89_v56, %v72_v51  ;;  %v92_v62 = vsub.f32 %v90_v61, %v73_v45 }
  0x7f   :  { %v79_v58 = vpop.permute.xlu0 %78 }
  0x80   :  { %v82_v59 = vsub.f32 %v79_v58, %v70_v38 }
  0x82   :  { %v93_v60 = vadd.f32 %v91_v57, %v82_v59 }
  0x84   :  { %95 = vst [vmem:[%s226_s6] sm:$0xff] %v93_v60 }
  0x87   :  { %v81_v63 = vpop.permute.xlu0 %80 }
  0x88   :  { %v83_v0 = vsub.f32 %v81_v63, %v71_v49 }
  0x8a   :  { %v94_v1 = vadd.f32 %v92_v62, %v83_v0 }
  0x8c   :  { %96 = vst [vmem:[%s226_s6 + $0x8] sm:$0xff] %v94_v1 }

// kernel: step.12
= control target key start
LH: loop header
LB: loop body
LE: loop exit
PB: predicated region body
PF: predicated region fallthrough
CT: control target
= control target key end

     0   :  { %s61_s28 = smov 127   ;;  %v41_v16 = vlaneseq  ;;  %s124_s0 = inlined_call_operand.vmem [shape: f32[2,16,128], index: 0, kind: input, shape index: {}]   ;;  %s125_s1 = inlined_call_operand.vmem [shape: f32[2,16,128], index: 1, kind: input, shape index: {}]   ;;  %s126_s2 = inlined_call_operand.vmem [shape: f32[2,16,128], index: 2, kind: output, shape index: {0}]   ;;  %s127_s3 = inlined_call_operand.vmem [shape: f32[16,128], index: 3, kind: output, shape index: {1}]  }
   0x1   :  { %v13_v0 = vld [vmem:[%s124_s0] sm:$0xff]  ;;  %v20_v2 = vld [vmem:[%s125_s1 + $0x18] sm:$0xff]  ;;  %v14_v4 = vld [vmem:[%s124_s0 + $0x8] sm:$0xff] }
   0x2   :  { %v17_v1 = vld [vmem:[%s125_s1] sm:$0xff]  ;;  %v18_v5 = vld [vmem:[%s125_s1 + $0x8] sm:$0xff]  ;;  %v24_v6 = vmul.f32 0.005, %v20_v2  ;;  %v15_v8 = vld [vmem:[%s124_s0 + $0x10] sm:$0xff]  ;;  %v42_v17 = vshrl.u32 %v41_v16, 7 }
   0x3   :  { %v21_v3 = vmul.f32 0.005, %v17_v1  ;;  %v22_v7 = vmul.f32 0.005, %v18_v5  ;;  %v19_v9 = vld [vmem:[%s125_s1 + $0x10] sm:$0xff]  ;;  %v16_v10 = vld [vmem:[%s124_s0 + $0x18] sm:$0xff] }
   0x4   :  { %v23_v12 = vmul.f32 0.005, %v19_v9  ;;  %v28_v15 = vadd.f32 %v24_v6, %v16_v10  ;;  %vm43_vm0 = vcmp.lt.s32.totalorder %v42_v17, 7 }
   0x5   :  { %v25_v11 = vadd.f32 %v21_v3, %v13_v0  ;;  %v26_v13 = vadd.f32 %v22_v7, %v14_v4 }
   0x6   :  { %v27_v14 = vadd.f32 %v23_v12, %v15_v8  ;;  %32 = vst [vmem:[%s126_s2 + $0x18] sm:$0xff] %v28_v15  ;;  %v40_v19 = vrot.slane %v28_v15, 1 }
   0x7   :  { %33 = vrot.lane.b32.xlu0 %v25_v11, %s61_s28  ;;  %29 = vst [vmem:[%s126_s2] sm:$0xff] %v25_v11 }
   0x8   :  { %30 = vst [vmem:[%s126_s2 + $0x8] sm:$0xff] %v26_v13  ;;  %v39_v18 = vrot.slane %v27_v14, 1 }
   0x9   :  { %31 = vst [vmem:[%s126_s2 + $0x10] sm:$0xff] %v27_v14 }
   0xa   :  { %v44_v20 = vsel %vm43_vm0, %v39_v18, %v40_v19  ;;  %v45_v25 = vsel %vm43_vm0, %v40_v19, %v39_v18 }
   0xb   :  { %v46_v21 = vsub.f32 %v44_v20, %v27_v14  ;;  %v47_v26 = vsub.f32 %v45_v25, %v28_v15 }
   0xf   :  { %35 = vrot.lane.b32.xlu0 %v26_v13, %s61_s28 }
  0x79   :  { %v34_v22 = vpop.permute.xlu0 %33 }
  0x7a   :  { %v37_v23 = vsub.f32 %v34_v22, %v25_v11 }
  0x7c   :  { %v48_v24 = vadd.f32 %v46_v21, %v37_v23 }
  0x7e   :  { %50 = vst [vmem:[%s127_s3] sm:$0xff] %v48_v24 }
  0x81   :  { %v36_v27 = vpop.permute.xlu0 %35 }
  0x82   :  { %v38_v28 = vsub.f32 %v36_v27, %v26_v13 }
  0x84   :  { %v49_v29 = vadd.f32 %v47_v26, %v38_v28 }
  0x86   :  { %51 = vst [vmem:[%s127_s3 + $0x8] sm:$0xff] %v49_v29 }

// kernel: step.17
= control target key start
LH: loop header
LB: loop body
LE: loop exit
PB: predicated region body
PF: predicated region fallthrough
CT: control target
= control target key end

     0   :  { %v22_v2 = vlaneseq  ;;  %s93_s13 = smov 1   ;;  %s133_s0 = inlined_call_operand.vmem [shape: f32[2,16,128], index: 0, kind: input, shape index: {}]   ;;  %s134_s1 = inlined_call_operand.vmem [shape: f32[16,128], index: 1, kind: input, shape index: {}]   ;;  %s135_s2 = inlined_call_operand.hbm [shape: f32[2,16,128], index: 2, kind: output, shape index: {}]  }
   0x1   :  { %v12_v0 = vld [vmem:[%s134_s1] sm:$0xff]  ;;  %v13_v1 = vld [vmem:[%s134_s1 + $0x8] sm:$0xff] }
   0x2   :  { %14 = vrot.lane.b32.xlu0 %v12_v0, %s93_s13  ;;  %v20_v3 = vrot.slane %v12_v0, 7  ;;  %v21_v4 = vrot.slane %v13_v1, 7 }
   0x3   :  { %7 = vsyncpa [#allocation3], 0  ;;  %v23_v5 = vshrl.u32 %v22_v2, 7  ;;  %v61_v6 = vld [vmem:[%s133_s0 + $0x10] sm:$0xff]  ;;  %v62_v7 = vld [vmem:[%s133_s0 + $0x18] sm:$0xff]  ;;  %s94_s19 = smov [#allocation2]  }
   0x4   :  { %v29_v14 = vld [vmem:[%s133_s0] sm:$0xff]  ;;  %s47_s20 = sshll.u32 %s94_s19, 4  ;;  %s49_s23 = sshll.u32 %s135_s2, 4  ;;  %v30_v18 = vld [vmem:[%s133_s0 + $0x8] sm:$0xff]  ;;  %s48_s20 = int_to_ptr.vmem [resolvable:$true] %s47_s20  ;;  %s50_s23 = int_to_ptr.hbm [resolvable:$true] %s49_s23 }
   0x5   :  { %vm24_vm0 = vcmp.lt.s32.totalorder %v23_v5, 1  ;;  %s95_s26 = smov 128   ;;  %s96_s27 = smov 8  }
   0x6   :  { %v25_v8 = vsel %vm24_vm0, %v20_v3, %v21_v4  ;;  %v26_v9 = vsel %vm24_vm0, %v21_v4, %v20_v3 }
   0x7   :  { %v27_v10 = vsub.f32 %v12_v0, %v26_v9  ;;  %v28_v11 = vsub.f32 %v13_v1, %v25_v8 }
   0x9   :  { %v38_v12 = vsub.f32 %v61_v6, %v27_v10  ;;  %v39_v13 = vsub.f32 %v62_v7, %v28_v11 }
   0xa   :  { %16 = vrot.lane.b32.xlu0 %v13_v1, %s93_s13 }
   0xb   :  { %41 = vst [vmem:[#allocation2 + $0x10] sm:$0xff] %v38_v12 }
   0xc   :  { %42 = vst [vmem:[#allocation2 + $0x18] sm:$0xff] %v39_v13 }
  0x74   :  { %v15_v15 = vpop.permute.xlu0 %14 }
  0x75   :  { %v18_v16 = vsub.f32 %v12_v0, %v15_v15 }
  0x77   :  { %v31_v17 = vsub.f32 %v29_v14, %v18_v16 }
  0x79   :  { %33 = vst [vmem:[#allocation2] sm:$0xff] %v31_v17 }
  0x7c   :  { %v17_v19 = vpop.permute.xlu0 %16 }
  0x7d   :  { %v19_v20 = vsub.f32 %v13_v1, %v17_v19 }
  0x7f   :  { %v32_v21 = vsub.f32 %v30_v18, %v19_v20 }
  0x81   :  { %34 = vst [vmem:[#allocation2 + $0x8] sm:$0xff] %v32_v21 }
  0x82   :  { %55 = dma.vmem_to_hbm [thread:$0]  %s48_s20, 512, %s50_s23, [#allocation3], %s95_s26, %s95_s26, %s96_s27  }
  0x83   :  { %91 = dma.done.wait [#allocation3], 512  }
  0x84   :  { %92 = vsyncadd [#allocation3], 4294966784 }
  0x85   :  { %60 = vsyncpa [#allocation3], 1 }

</bundles_post_ra>
